<compile_context>
chip_gen: v6e
topology: v6e:2x2x1
jax: 0.10.0
libtpu: 0.0.40
codegen_flags: <defaults>
</compile_context>

<pallas_src>
from collections import defaultdict
from functools import partial

import numpy as np
import jax
import jax.numpy as jnp
from jax.experimental import pallas as pl
from jax.experimental.pallas import tpu as pltpu

GARMENT_TYPE = ["Tshirt", "Pants", "Skirt", "Dress", "Jacket"]

EPS = 1e-7
MIN_DIFF = 1e-8

_LANE = 128
_ROW_MULT = 32                      # row-tile multiple (covers int8 sublane packing)
_VMEM_LIMIT = 32 * 1024 * 1024      # safe scoped limit on v5e/v6e/v7x


# --------------------------------------------------------------------------- #
# Pallas kernel: masked relative error, reduced per node
# --------------------------------------------------------------------------- #
def _cmp_error_kernel(gather_ref, pred_ref, label_ref, hop_ref,
                      sum_ref, cnt_ref, *, rows):
    """Blocks (leading batch dim squeezed by the `None` in the BlockSpec):

        gather     : (L, G)       constant bf16 0/1 lane->node matrix (resident)
        pred/label : (TILE_R, L)  L = G * Dp lanes; G nodes of Dp energies per row
        hop        : (TILE_R, L)  int8 / bool / float mask, compared in native dtype
        sum/cnt    : (TILE_R, G)  per-node masked error-sum / valid-count
    """
    pred = pred_ref[...].astype(jnp.float32)
    label = label_ref[...].astype(jnp.float32)
    # compare in the packed dtype -> no int8->f32 unpack (VALU win on v7x);
    # NOTE: any nonzero float mask value counts as valid (masks are {0,1}).
    hop_ok = hop_ref[...] != 0

    abs_label = jnp.abs(label)
    valid = jnp.logical_and(hop_ok, abs_label > MIN_DIFF)

    tr = pred.shape[0]
    if rows % tr != 0:
        # Ragged last row tile: Pallas clips the edge DMA, so out-of-bounds rows
        # of the VMEM buffer hold garbage -> mask them (the jnp.where below also
        # removes any NaN/Inf that garbage may have produced).
        row = jax.lax.broadcasted_iota(jnp.int32, (tr, 1), 0)
        in_bounds = (pl.program_id(1) * tr + row) < rows
        valid = jnp.logical_and(valid, in_bounds)

    # relative error; approx reciprocal -> EUP slot, off the critical path
    # (deviates ~2^-12 from an exact divide; fine for an accuracy metric).
    rel = jnp.abs(label - pred) * pl.reciprocal(abs_label + EPS, approx=True)
    rel = jnp.where(valid, rel, 0.0)

    # Sum groups of Dp adjacent lanes (= one node each) on the MXU — free slot
    # in this HBM-bound kernel, avoids cross-lane relayouts.  bf16 operands keep
    # the single-pass MXU path; gather / counts are exact in bf16, accumulation
    # stays f32 via preferred_element_type.
    gather = gather_ref[...]
    sum_ref[...] = jnp.dot(rel.astype(jnp.bfloat16), gather,
                           preferred_element_type=jnp.float32)
    cnt_ref[...] = jnp.dot(valid.astype(jnp.bfloat16), gather,
                           preferred_element_type=jnp.float32)


def _pack_geometry(d):
    """Choose (padded D, nodes-per-row G, lanes-per-row L) so the lane axis is dense."""
    if d % _LANE == 0:
        return d, 1, d
    if d < _LANE:
        dp = max(1, 1 << max(0, (d - 1).bit_length()))  # next pow2 >= d (divides 128)
        return dp, _LANE // dp, _LANE
    dp = ((d + _LANE - 1) // _LANE) * _LANE
    return dp, 1, dp


def _per_node_error(pred, target, hop_mask, *, tile_rows=4096):
    """Per-node (error-sum, valid-count), each (B, N_round) with N_round = ceil(N/G)*G.

    Padding only happens when strictly required for the lane-dense repacking;
    the ragged row-tile tail is handled inside the kernel, not by jnp.pad.
    Padded nodes / padded energy lanes contribute exact zeros to both outputs.
    """
    b, n, d = pred.shape
    dp, g, l = _pack_geometry(d)

    if dp != d:  # strictly-needed energy pad (zero label -> invalid -> no contribution)
        padd = [(0, 0), (0, 0), (0, dp - d)]
        pred, target, hop_mask = (jnp.pad(a, padd) for a in (pred, target, hop_mask))

    n_round = -(-n // g) * g
    if n_round != n:
        # TODO(synk): strictly-needed node pad so the lane-dense reshape is exact;
        # could be removed by handling the < G-node tail outside the kernel.
        padn = [(0, 0), (0, n_round - n), (0, 0)]
        pred, target, hop_mask = (jnp.pad(a, padn) for a in (pred, target, hop_mask))

    rows = n_round // g

    tr = max(_ROW_MULT, (min(int(tile_rows), rows) // _ROW_MULT) * _ROW_MULT)
    if b == 1 and rows > _ROW_MULT:
        # v7x has 2 TensorCores per chip; guarantee >= 2 parallel grid steps.
        half = -(-rows // 2)
        half = -(-half // _ROW_MULT) * _ROW_MULT
        tr = min(tr, half)
    n_tiles = pl.cdiv(rows, tr)

    # free reshapes for contiguous row-major data: (B, N_round, Dp) -> (B, R, L)
    pred = pred.reshape(b, rows, l)
    target = target.reshape(b, rows, l)
    hop_mask = hop_mask.reshape(b, rows, l)

    # constant 0/1 lane->node gather matrix, built once (bf16 is exact for 0/1)
    lane = np.arange(l)
    gather = jnp.asarray(lane[:, None] // dp == np.arange(g)[None, :],
                         dtype=jnp.bfloat16)

    blk_gather = pl.BlockSpec((l, g), lambda bi, ri: (0, 0))
    blk_in = pl.BlockSpec((None, tr, l), lambda bi, ri: (bi, ri, 0))
    blk_out = pl.BlockSpec((None, tr, g), lambda bi, ri: (bi, ri, 0))

    node_sum, node_cnt = pl.pallas_call(
        partial(_cmp_error_kernel, rows=rows),
        out_shape=(
            jax.ShapeDtypeStruct((b, rows, g), jnp.float32),
            jax.ShapeDtypeStruct((b, rows, g), jnp.float32),
        ),
        grid=(b, n_tiles),
        in_specs=[blk_gather, blk_in, blk_in, blk_in],
        out_specs=(blk_out, blk_out),
        compiler_params=pltpu.CompilerParams(
            dimension_semantics=("parallel", "parallel"),
            vmem_limit_bytes=_VMEM_LIMIT,
        ),
    )(gather, pred, target, hop_mask)

    return node_sum.reshape(b, n_round), node_cnt.reshape(b, n_round)


# --------------------------------------------------------------------------- #
# Device-side per-garment reduction (inside jit, no host round trip)
# --------------------------------------------------------------------------- #
@partial(jax.jit, static_argnames=("reduction", "tile_rows"))
def _per_garment_error(pred, target, hop_mask, indices, *, reduction="mean",
                       tile_rows=4096):
    """indices: (B, n_garments + 1) int -> per-garment error (B, n_garments)."""
    node_sum, node_cnt = _per_node_error(pred, target, hop_mask, tile_rows=tile_rows)
    b, n_tot = node_sum.shape
    ng = indices.shape[1] - 1
    indices = indices.astype(jnp.int32)

    # garment id per node + single-pass segment reduction (replaces two cumsums)
    node_idx = jnp.arange(n_tot, dtype=jnp.int32)
    gid = jnp.sum(node_idx[None, :, None] >= indices[:, None, 1:], axis=-1)  # (B, N)
    in_range = jnp.logical_and(node_idx[None, :] >= indices[:, :1], gid < ng)
    gid = jnp.minimum(gid, ng - 1)
    seg = (jnp.arange(b, dtype=jnp.int32)[:, None] * ng + gid).reshape(-1)

    g_sum = jax.ops.segment_sum(
        jnp.where(in_range, node_sum, 0.0).reshape(-1), seg,
        num_segments=b * ng, indices_are_sorted=True).reshape(b, ng)
    g_cnt = jax.ops.segment_sum(
        jnp.where(in_range, node_cnt, 0.0).reshape(-1), seg,
        num_segments=b * ng, indices_are_sorted=True).reshape(b, ng)

    if reduction == "mean":
        # NOTE: a garment slice with zero valid nodes reports 0 (count clamped to 1),
        # whereas a torch mean over an empty selection would be NaN.
        return g_sum / jnp.maximum(g_cnt, 1.0)
    return g_sum


def compare_accuracy(pred, target, indices, indices_type, hop_mask,
                     prefix="accuracy_cmp", reduction="mean", tile_rows=4096):
    """JAX/Pallas equivalent of CompareAccuracy.forward -> accuracy_compare_energy."""
    indices = jnp.asarray(indices)
    g_err = _per_garment_error(pred, target, hop_mask, indices,
                               reduction=reduction, tile_rows=tile_rows)
    g_type = np.argmax(np.asarray(indices_type), axis=-1)        # (B, n_garments)

    # only the tiny (B, n_garments) result crosses to the host for dict assembly
    g_err = np.asarray(jax.block_until_ready(g_err))

    acc_dict = defaultdict(list)
    bs, n_garments = g_err.shape
    for bi in range(bs):
        for gi in range(n_garments):
            acc_dict[GARMENT_TYPE[int(g_type[bi, gi])]].append(float(g_err[bi, gi]))
    return {f"{prefix}.{k}": float(np.mean(v)) for k, v in acc_dict.items()}


# --------------------------------------------------------------------------- #
# Demo / self-test
# --------------------------------------------------------------------------- #
if __name__ == "__main__":
    # batch=2 outfits, N=1040 nodes per outfit (65 packed rows -> ragged last
    # tile at tile_rows=32), D=8 energy components
    B, N, D = 2, 1040, 8
    key = jax.random.PRNGKey(0)
    k_pred, k_lab, k_hop = jax.random.split(key, 3)

    pred = jax.random.normal(k_pred, (B, N, D), dtype=jnp.float32)
    target = jax.random.normal(k_lab, (B, N, D), dtype=jnp.float32)
    # int8 mask: ~25% less HBM read traffic than a float32 mask
    hop_mask = (jax.random.uniform(k_hop, (B, N, D)) > 0.2).astype(jnp.int8)

    # indices: per-outfit cumulative garment boundaries (bs, n_garments + 1)
    indices = jnp.array([[0, 400, 1040],
                         [0, 512, 1040]], dtype=jnp.int32)
    # indices_type: one-hot garment type per garment (bs, n_garments, num_types)
    indices_type = np.zeros((B, 2, len(GARMENT_TYPE)), dtype=np.float32)
    indices_type[0, 0, 0] = 1.0  # Tshirt
    indices_type[0, 1, 1] = 1.0  # Pants
    indices_type[1, 0, 3] = 1.0  # Dress
    indices_type[1, 1, 1] = 1.0  # Pants

    # small tile_rows so the demo exercises a multi-tile grid + ragged last tile
    acc = compare_accuracy(pred, target, indices, indices_type, hop_mask,
                           prefix="accuracy_cmp", reduction="mean", tile_rows=32)

    # pure-numpy reference of the same (assumed) cmp_error formula
    p = np.asarray(pred, np.float32)
    t = np.asarray(target, np.float32)
    h = np.asarray(hop_mask) != 0
    rel = np.abs(t - p) / (np.abs(t) + EPS)
    valid = h & (np.abs(t) > MIN_DIFF)
    node_sum_ref = (rel * valid).sum(-1)
    node_cnt_ref = valid.sum(-1).astype(np.float32)

    ref = defaultdict(list)
    idx = np.asarray(indices)
    ityp = np.asarray(indices_type)
    for bi in range(B):
        for gi in range(idx.shape[1] - 1):
            s, e = int(idx[bi, gi]), int(idx[bi, gi + 1])
            gs = float(node_sum_ref[bi, s:e].sum())
            gc = float(node_cnt_ref[bi, s:e].sum())
            ref[GARMENT_TYPE[int(np.argmax(ityp[bi, gi]))]].append(gs / max(gc, 1.0))
    ref = {f"accuracy_cmp.{k}": float(np.mean(v)) for k, v in ref.items()}

    assert set(acc) == set(ref), (sorted(acc), sorted(ref))
    for k in ref:
        assert np.isfinite(acc[k]), (k, acc[k])
        assert abs(acc[k] - ref[k]) <= 1e-2 * abs(ref[k]) + 1e-4, (k, acc[k], ref[k])
    print("KERNEL_OK")
</pallas_src>

<mosaic_0001>
module attributes {stable_mosaic.version = 11 : i64} {
  func.func private @main(%arg0: i32) attributes {dimension_semantics = [#tpu.dimension_semantics<core_parallel>], iteration_bounds = array<i64: 2>, tpu.core_type = #tpu.core_type<sc_scalar_subcore>, window_params = []} {
    return
  }
}

module attributes {stable_mosaic.version = 11 : i64} {
  func.func private @main(%arg0: i32) attributes {dimension_semantics = [#tpu.dimension_semantics<core_parallel>], iteration_bounds = array<i64: 2>, tpu.core_type = #tpu.core_type<sc_scalar_subcore>, window_params = []} {
    return
  }
}

module attributes {stable_mosaic.version = 11 : i64} {
  func.func @_cmp_error_kernel(%arg0: i32, %arg1: i32, %arg2: memref<128x16xbf16, #tpu.memory_space<vmem>>, %arg3: memref<1x32x128xf32, #tpu.memory_space<vmem>>, %arg4: memref<1x32x128xf32, #tpu.memory_space<vmem>>, %arg5: memref<1x32x128xi8, #tpu.memory_space<vmem>>, %arg6: memref<1x32x16xf32, #tpu.memory_space<vmem>>, %arg7: memref<1x32x16xf32, #tpu.memory_space<vmem>>) attributes {dimension_semantics = [#tpu.dimension_semantics<parallel>, #tpu.dimension_semantics<parallel>], iteration_bounds = array<i64: 2, 3>, scalar_prefetch = 0 : i64, scratch_operands = 0 : i64, tpu.core_type = #tpu.core_type<tc>, window_params = [{pipeline_mode = #tpu.pipeline_mode<synchronous>, transform_indices = @transform_0, window_bounds = array<i64: 128, 16>}, {transform_indices = @transform_1, window_bounds = array<i64: 1, 32, 128>}, {transform_indices = @transform_2, window_bounds = array<i64: 1, 32, 128>}, {transform_indices = @transform_3, window_bounds = array<i64: 1, 32, 128>}, {transform_indices = @transform_4, window_bounds = array<i64: 1, 32, 16>}, {transform_indices = @transform_5, window_bounds = array<i64: 1, 32, 16>}]} {
    %c0 = arith.constant 0 : index
    %c0_0 = arith.constant 0 : index
    %c0_1 = arith.constant 0 : index
    %0 = vector.load %arg3[%c0, %c0_0, %c0_1] : memref<1x32x128xf32, #tpu.memory_space<vmem>>, vector<1x32x128xf32>
    %1 = vector.shape_cast %0 : vector<1x32x128xf32> to vector<32x128xf32>
    %c0_2 = arith.constant 0 : index
    %c0_3 = arith.constant 0 : index
    %c0_4 = arith.constant 0 : index
    %2 = vector.load %arg4[%c0_2, %c0_3, %c0_4] : memref<1x32x128xf32, #tpu.memory_space<vmem>>, vector<1x32x128xf32>
    %3 = vector.shape_cast %2 : vector<1x32x128xf32> to vector<32x128xf32>
    %c0_5 = arith.constant 0 : index
    %c0_6 = arith.constant 0 : index
    %c0_7 = arith.constant 0 : index
    %4 = vector.load %arg5[%c0_5, %c0_6, %c0_7] : memref<1x32x128xi8, #tpu.memory_space<vmem>>, vector<1x32x128xi8>
    %5 = vector.shape_cast %4 : vector<1x32x128xi8> to vector<32x128xi8>
    %c0_i8 = arith.constant 0 : i8
    %6 = vector.broadcast %c0_i8 : i8 to vector<32x128xi8>
    %7 = arith.cmpi ne, %5, %6 : vector<32x128xi8>
    %8 = math.absf %3 : vector<32x128xf32>
    %cst = arith.constant 9.99999993E-9 : f32
    %9 = vector.broadcast %cst : f32 to vector<32x128xf32>
    %10 = arith.cmpf ogt, %8, %9 : vector<32x128xf32>
    %11 = arith.andi %7, %10 : vector<32x128xi1>
    %12 = tpu.iota {dimensions = array<i32: 0>} : vector<32x1xi32>
    %c32_i32 = arith.constant 32 : i32
    %13 = arith.muli %arg1, %c32_i32 : i32
    %14 = vector.broadcast %13 : i32 to vector<32x1xi32>
    %15 = arith.addi %14, %12 : vector<32x1xi32>
    %c65_i32 = arith.constant 65 : i32
    %16 = vector.broadcast %c65_i32 : i32 to vector<32x1xi32>
    %17 = arith.cmpi slt, %15, %16 : vector<32x1xi32>
    %18 = vector.broadcast %17 : vector<32x1xi1> to vector<32x128xi1>
    %19 = arith.andi %11, %18 : vector<32x128xi1>
    %20 = arith.subf %3, %1 : vector<32x128xf32>
    %21 = math.absf %20 : vector<32x128xf32>
    %cst_8 = arith.constant 1.000000e-07 : f32
    %22 = vector.broadcast %cst_8 : f32 to vector<32x128xf32>
    %23 = arith.addf %8, %22 : vector<32x128xf32>
    %24 = tpu.reciprocal %23 {approx = true} : vector<32x128xf32> -> vector<32x128xf32>
    %25 = arith.mulf %21, %24 : vector<32x128xf32>
    %cst_9 = arith.constant 0.000000e+00 : f32
    %26 = vector.broadcast %cst_9 : f32 to vector<32x128xf32>
    %27 = arith.select %19, %25, %26 : vector<32x128xi1>, vector<32x128xf32>
    %c0_10 = arith.constant 0 : index
    %c0_11 = arith.constant 0 : index
    %28 = vector.load %arg2[%c0_10, %c0_11] : memref<128x16xbf16, #tpu.memory_space<vmem>>, vector<128x16xbf16>
    %29 = arith.truncf %27 : vector<32x128xf32> to vector<32x128xbf16>
    %cst_12 = arith.constant dense<0.000000e+00> : vector<32x16xf32>
    %30 = tpu.matmul %29, %28, %cst_12 {dimension_numbers = #tpu.dot_dimension_numbers<[1], [0], [0], [1], [0, 0, 1, 1], [], []>} : vector<32x128xbf16>, vector<128x16xbf16>, vector<32x16xf32> -> vector<32x16xf32>
    %c0_13 = arith.constant 0 : index
    %c0_14 = arith.constant 0 : index
    %c0_15 = arith.constant 0 : index
    %31 = vector.load %arg6[%c0_13, %c0_14, %c0_15] : memref<1x32x16xf32, #tpu.memory_space<vmem>>, vector<1x32x16xf32>
    %32 = vector.shape_cast %31 : vector<1x32x16xf32> to vector<32x16xf32>
    %33 = vector.shape_cast %30 : vector<32x16xf32> to vector<1x32x16xf32>
    tpu.vector_store %arg6[%c0_13, %c0_14, %c0_15], %33 {strides = array<i32>} : memref<1x32x16xf32, #tpu.memory_space<vmem>>, vector<1x32x16xf32>,
    %34 = arith.extui %19 : vector<32x128xi1> to vector<32x128xi32>
    %35 = arith.sitofp %34 : vector<32x128xi32> to vector<32x128xf32>
    %36 = arith.truncf %35 : vector<32x128xf32> to vector<32x128xbf16>
    %cst_16 = arith.constant dense<0.000000e+00> : vector<32x16xf32>
    %37 = tpu.matmul %36, %28, %cst_16 {dimension_numbers = #tpu.dot_dimension_numbers<[1], [0], [0], [1], [0, 0, 1, 1], [], []>} : vector<32x128xbf16>, vector<128x16xbf16>, vector<32x16xf32> -> vector<32x16xf32>
    %c0_17 = arith.constant 0 : index
    %c0_18 = arith.constant 0 : index
    %c0_19 = arith.constant 0 : index
    %38 = vector.load %arg7[%c0_17, %c0_18, %c0_19] : memref<1x32x16xf32, #tpu.memory_space<vmem>>, vector<1x32x16xf32>
    %39 = vector.shape_cast %38 : vector<1x32x16xf32> to vector<32x16xf32>
    %40 = vector.shape_cast %37 : vector<32x16xf32> to vector<1x32x16xf32>
    tpu.vector_store %arg7[%c0_17, %c0_18, %c0_19], %40 {strides = array<i32>} : memref<1x32x16xf32, #tpu.memory_space<vmem>>, vector<1x32x16xf32>,
    return
  }
  func.func @transform_0(%arg0: i32, %arg1: i32) -> (i32, i32) {
    %c0_i32 = arith.constant 0 : i32
    %c0_i32_0 = arith.constant 0 : i32
    %c0_i32_1 = arith.constant 0 : i32
    return %c0_i32, %c0_i32_0 : i32, i32
  }
  func.func @transform_1(%arg0: i32, %arg1: i32) -> (i32, i32, i32) {
    %c0_i32 = arith.constant 0 : i32
    %c0_i32_0 = arith.constant 0 : i32
    return %arg0, %arg1, %c0_i32 : i32, i32, i32
  }
  func.func @transform_2(%arg0: i32, %arg1: i32) -> (i32, i32, i32) {
    %c0_i32 = arith.constant 0 : i32
    %c0_i32_0 = arith.constant 0 : i32
    return %arg0, %arg1, %c0_i32 : i32, i32, i32
  }
  func.func @transform_3(%arg0: i32, %arg1: i32) -> (i32, i32, i32) {
    %c0_i32 = arith.constant 0 : i32
    %c0_i32_0 = arith.constant 0 : i32
    return %arg0, %arg1, %c0_i32 : i32, i32, i32
  }
  func.func @transform_4(%arg0: i32, %arg1: i32) -> (i32, i32, i32) {
    %c0_i32 = arith.constant 0 : i32
    %c0_i32_0 = arith.constant 0 : i32
    return %arg0, %arg1, %c0_i32 : i32, i32, i32
  }
  func.func @transform_5(%arg0: i32, %arg1: i32) -> (i32, i32, i32) {
    %c0_i32 = arith.constant 0 : i32
    %c0_i32_0 = arith.constant 0 : i32
    return %arg0, %arg1, %c0_i32 : i32, i32, i32
  }
}

</mosaic_0001>

<bundles_post_ra>
// kernel: _per_garment_error.1
= control target key start
LH: loop header
LB: loop body
LE: loop exit
PB: predicated region body
PF: predicated region fallthrough
CT: control target
= control target key end

     0   :  { %s2107_s0 = inlined_call_operand.vmem [shape: bf16[128,16], index: 0, kind: input, shape index: {}]   ;;  %s2108_s1 = inlined_call_operand.vmem [shape: f32[2,65,128], index: 1, kind: input, shape index: {}]   ;;  %s2109_s2 = inlined_call_operand.vmem [shape: f32[2,65,128], index: 2, kind: input, shape index: {}]   ;;  %s2110_s3 = inlined_call_operand.vmem [shape: s8[2,65,128], index: 3, kind: input, shape index: {}]   ;;  %s2111_s4 = inlined_call_operand.vmem [shape: f32[2,65,16], index: 4, kind: output, shape index: {0}]   ;;  %s2112_s5 = inlined_call_operand.vmem [shape: f32[2,65,16], index: 5, kind: output, shape index: {1}]  }
   0x1   :  { %2113 = sst [smem:[#allocation4_spill]] %s2107_s0 }
   0x2   :  { %2114 = sst [smem:[#allocation5_spill]] %s2108_s1 }
   0x3   :  { %s1742_s18 = smov 0   ;;  %s1744_s19 = smov 0  }
   0x4   :  { %s1746_s20 = smov 0   ;;  %s1748_s21 = smov 0  }
   0x5   :  { %s1750_s22 = smov 0   ;;  %s1752_s23 = smov 0  }
   0x6   :  { %s1754_s24 = smov 0  }
   0x7 LB: > { %s25_s25 = sadd.s32 1, %s1636_s22  ;;  %s28_s26 = sadd.s32 1, %s1640_s23  ;;  %s1644_s24 = sphi %s1754_s24, %s16_s24   ;;  %s1640_s23 = sphi %s1752_s23, %s2149_s23   ;;  %s1636_s22 = sphi %s1750_s22, %s2148_s22   ;;  %s1632_s21 = sphi %s1748_s21, %s2147_s21   ;;  %s1628_s20 = sphi %s1746_s20, %s2146_s20   ;;  %s1624_s19 = sphi %s1744_s19, %s2145_s19   ;;  %s1620_s18 = sphi %s1742_s18, %s2144_s18  }
   0x8   : > { %p26_p0 = scmp.ge.s32.totalorder %s25_s25, 3  ;;  %s1189_s27 = sadd.s32 4294967295, %s1644_s24  }
   0x9   : > { %p152_p1 = scmp.ne.s32.totalorder %s1624_s19, %s1620_s18  ;;  %p153_p2 = scmp.eq.s32.totalorder %s1189_s27, 5 }
   0xa   : > { %s2151_s25 = smov (%p26_p0, %s25_s25), 0  ;;  %s2153_s26 = smov (!%p26_p0, %s28_s26), %s1640_s23 }
   0xb   : > { %s138_s28 = ssub.s32 %s1636_s22, %s2151_s25  ;;  %p30_p3 = scmp.ge.s32.totalorder %s2153_s26, 2 }
   0xc   : > { %p1193_p4 = scmp.ge.s32.totalorder %s1644_s24, 1  ;;  %p1788_p5 = por %p153_p2, %p152_p1 }
   0xd   : > { %p271_p6 = scmp.lt.s32.totalorder %s1644_s24, 7  ;;  %s2155_s26 = smov (%p30_p3, %s2153_s26), 0 }
   0xe   : > { %s137_s30 = ssub.s32 %s1640_s23, %s2155_s26  ;;  %s142_s7 = sadd.s32 1, %s1624_s19 }
   0xf   : > { %p272_p7 = pnand %p1193_p4, %p271_p6  ;;  %s139_s6 = sor.u32 %s138_s28, %s137_s30 }
  0x10   : > { %p140_p8 = scmp.eq.s32.totalorder %s139_s6, 0  ;;  %s2116_s0 = sld [smem:[#allocation4_spill]] (!%p272_p7) }
  0x11   : > { %275 = sbr.rel (%p272_p7) target bundleno = 343 (0x157), region = 36  ;;  %s1805_s11 = sshll.u32 (!%p272_p7), %s1628_s20, 2 }
  0x12   : > { %s1799_s8 = scalar_select %p140_p8, %s1624_s19, %s142_s7  }
  0x13   : > { %p341_p9 = scmp.lt.s32.totalorder (!%p272_p7), %s1632_s21, 1  ;;  %p343_p10 = scmp.lt.s32.totalorder (!%p272_p7), %s1805_s11, 8 }
  0x14   : > { %s1202_s30 = sshll.u32 (!%p272_p7), %s1628_s20, 5  ;;  %s2123_s1 = sld [smem:[#allocation5_spill]] (!%p272_p7) }
  0x15   : > { %s327_s20 = sand.u32 (!%p272_p7), 1, %s1620_s18  }
  0x16   : > { %v1510_v0 = vld [vmem:[%s2116_s0 + $0x38] sm:$0xff]   ;;  %v1511_v1 = vld [vmem:[%s2116_s0 + $0x30] sm:$0xff]   ;;  %v439_v2 = vlaneseq  ;;  %s342_s14 = scalar_select %p341_p9, %s1632_s21, 1  ;;  %v1512_v3 = vld [vmem:[%s2116_s0 + $0x28] sm:$0xff]   ;;  %v1828_v7 = vstv %s1202_s30  ;;  %v1710_v38 = vmov 0  }
  0x17   : > { %1281 = vmatprep.subr.bf16.mxu0 %v1510_v0  ;;  %1301 = vmatprep.subr.bf16.mxu1 %v1510_v0  ;;  %s344_s17 = scalar_select %p343_p10, %s1805_s11, 8  ;;  %v1513_v5 = vld [vmem:[%s2116_s0 + $0x20] sm:$0xff]   ;;  %v1514_v11 = vld [vmem:[%s2116_s0 + $0x18] sm:$0xff]   ;;  %v1515_v24 = vld [vmem:[%s2116_s0 + $0x10] sm:$0xff]   ;;  %v1711_v58 = vmov 1.0|1.0  }
  0x18   : > { %1282 = vmatpush3.bf16.msra.mxu0 %v1510_v0  ;;  %1302 = vmatpush3.bf16.msra.mxu1 %v1510_v0  ;;  %s1321_s27 = smul.u32 9, %s342_s14  ;;  %v1817_v4 = vshrl.u32 %v439_v2, 7  ;;  %v1516_v30 = vld [vmem:[%s2116_s0 + $0x8] sm:$0xff]   ;;  %v1517_v34 = vld [vmem:[%s2116_s0] sm:$0xff]   ;;  %s1194_s15 = sshll.u32 %s327_s20, 5 }
  0x19   : > { %1283 = vmatprep.subr.bf16.mxu0 %v1511_v1  ;;  %1303 = vmatprep.subr.bf16.mxu1 %v1511_v1  ;;  %s705_s18 = ssub.s32 (%p1788_p5), 9, %s1805_s11 }
  0x1a   : > { %s1819_s28 = sadd.s32 %s1321_s27, %s344_s17  ;;  %v441_v6 = vadd.s32 8, %v1817_v4  ;;  %v446_v8 = vadd.s32 %v1828_v7, %v1817_v4  ;;  %v442_v32 = vadd.s32 16, %v1817_v4  ;;  %v443_v36 = vadd.s32 24, %v1817_v4  ;;  %s1976_s17 = scalar_lea.vmem [#allocation3], %s1194_s15  }
  0x1b   : > { %s1197_s9 = sshll.u32 %s1819_s28, 3  ;;  %s1201_s10 = sshll.u32 %s1819_s28, 1 }
  0x1c   : > { %1284 = vmatpush3.bf16.msra.mxu0 %v1511_v1  ;;  %1304 = vmatpush3.bf16.msra.mxu1 %v1511_v1  ;;  %s366_s14 = scalar_lea.vmem %s2109_s2, %s1197_s9  ;;  %s1840_s16 = scalar_lea.vmem %s2110_s3, %s1201_s10  ;;  %v447_v10 = vadd.s32 %v1828_v7, %v441_v6  ;;  %vm450_vm0 = vcmp.lt.s32.totalorder %v446_v8, 65  ;;  %v448_v46 = vadd.s32 %v1828_v7, %v442_v32  ;;  %v449_v52 = vadd.s32 %v1828_v7, %v443_v36 }
  0x1d   : > { %1285 = vmatprep.subr.bf16.mxu0 %v1512_v3  ;;  %1305 = vmatprep.subr.bf16.mxu1 %v1512_v3  ;;  %v1842_v9 = vld [vmem:[%s366_s14] sm:$0xff]  ;;  %v1848_v12 = vld [vmem:[%s366_s14 + $0x8] sm:$0xff]  ;;  %vm1854_vm1 = vmpackc.low %vm450_vm0, %vm450_vm0  ;;  %s1881_s12 = scalar_lea.vmem %s2123_s1, %s1197_s9  ;;  %s1322_s27 = smul.u32 (%p1788_p5), 9, %s1632_s21 }
  0x1e   : > { %v411_v13 = vld [vmem:[%s1840_s16] sm:$0x3]  ;;  %v412_v14 = vld [vmem:[%s1840_s16 + $0x2] sm:$0x3]  ;;  %v419_v15 = vand.u32 2147483647, %v1842_v9  ;;  %vm463_vm3 = vmpackc.even %vm1854_vm1, %vm1854_vm1 }
  0x1f   : > { %v420_v16 = vand.u32 2147483647, %v1848_v12  ;;  %vm451_vm2 = vcmp.lt.s32.totalorder %v447_v10, 65  ;;  %v1861_v18 = vld [vmem:[%s366_s14 + $0x10] sm:$0xff]  ;;  %v1863_v19 = vld [vmem:[%s366_s14 + $0x18] sm:$0xff]  ;;  %vm415_vm8 = vnez %v411_v13  ;;  %vm416_vm10 = vnez %v412_v14  ;;  %v403_v27 = vld [vmem:[%s1881_s12] sm:$0xff]  ;;  %s711_s30 = sadd.s32 (%p1788_p5), %s1322_s27, %s1805_s11 }
  0x20   : > { %1286 = vmatpush3.bf16.msra.mxu0 %v1512_v3  ;;  %1306 = vmatpush3.bf16.msra.mxu1 %v1512_v3  ;;  %vm423_vm4 = vcmp.gt.f32.partialorder %v419_v15, 1e-08  ;;  %vm1869_vm6 = vmpackc.low %vm451_vm2, %vm451_vm2  ;;  %v482_v22 = vadd.f32 1e-07, %v419_v15  ;;  %v421_v25 = vand.u32 2147483647, %v1861_v18  ;;  %v474_v35 = vsub.f32 %v1842_v9, %v403_v27 }
  0x21   : > { %1287 = vmatprep.subr.bf16.mxu0 %v1513_v5  ;;  %1307 = vmatprep.subr.bf16.mxu1 %v1513_v5  ;;  %vm1865_vm5 = vcmp.gt.f32.partialorder %v420_v16, 1e-08  ;;  %vm427_vm7 = vmpackc.low %vm423_vm4, %vm423_vm4  ;;  %v483_v23 = vadd.f32 1e-07, %v420_v16  ;;  %v422_v26 = vand.u32 2147483647, %v1863_v19 }
  0x22   : > { %vm428_vm9 = vmpackc.even %vm427_vm7, %vm427_vm7  ;;  %1518 = vrcp.f32 %v482_v22  ;;  %v484_v28 = vadd.f32 1e-07, %v421_v25  ;;  %v404_v31 = vld [vmem:[%s1881_s12 + $0x8] sm:$0xff]  ;;  %vm1897_vm0 = vcmp.gt.f32.partialorder %v421_v25, 1e-08  ;;  %v405_v44 = vld [vmem:[%s1881_s12 + $0x10] sm:$0xff] }
  0x23   : > { %vm429_vm11 = vmpackc.low %vm1865_vm5, %vm1865_vm5  ;;  %1520 = vrcp.f32 %v483_v23  ;;  %v485_v29 = vadd.f32 1e-07, %v422_v26  ;;  %v475_v37 = vsub.f32 %v1848_v12, %v404_v31  ;;  %v413_v40 = vld [vmem:[%s1840_s16 + $0x4] sm:$0x3]  ;;  %vm1913_vm5 = vcmp.gt.f32.partialorder %v422_v26, 1e-08 }
  0x24   : > { %1288 = vmatpush3.bf16.msra.mxu0 %v1513_v5  ;;  %1308 = vmatpush3.bf16.msra.mxu1 %v1513_v5  ;;  %vm430_vm12 = vmpackc.even %vm429_vm11, %vm429_vm11  ;;  %1522 = vrcp.f32 %v484_v28  ;;  %v414_v45 = vld [vmem:[%s1840_s16 + $0x6] sm:$0x3]  ;;  %v406_v48 = vld [vmem:[%s1881_s12 + $0x18] sm:$0xff]  ;;  %v478_v50 = vand.u32 2147483647, %v474_v35  ;;  %vm417_vm7 = vnez %v413_v40  ;;  %v476_v55 = vsub.f32 %v1861_v18, %v405_v44  ;;  %s1972_s16 = scalar_lea.vmem [#allocation2], %s1194_s15  }
  0x25   : > { %1289 = vmatprep.subr.bf16.mxu0 %v1514_v11  ;;  %1309 = vmatprep.subr.bf16.mxu1 %v1514_v11  ;;  %vm435_vm13 = vmand %vm415_vm8, %vm428_vm9  ;;  %1524 = vrcp.f32 %v485_v29  ;;  %v479_v53 = vand.u32 2147483647, %v475_v37  ;;  %v477_v56 = vsub.f32 %v1863_v19, %v406_v48  ;;  %p706_p11 = scmp.lt.s32.totalorder (%p1788_p5), %s705_s18, 4  ;;  %s1230_s6 = sshll.u32 (%p1788_p5), %s711_s30, 3 }
  0x26   : > { %vm436_vm14 = vmand %vm416_vm10, %vm430_vm12  ;;  %vm418_vm10 = vnez %v414_v45  ;;  %v480_v0 = vand.u32 2147483647, %v476_v55  ;;  %s2003_s28 = scalar_lea.vmem (%p1788_p5), %s2111_s4, %s1230_s6  }
  0x27   : > { %vm465_vm15 = vmpackc.even %vm1869_vm6, %vm1869_vm6  ;;  %v481_v1 = vand.u32 2147483647, %v477_v56 }
  0x28   : > { %1290 = vmatpush3.bf16.msra.mxu0 %v1514_v11  ;;  %1310 = vmatpush3.bf16.msra.mxu1 %v1514_v11  ;;  %vm470_vm2 = vmand %vm435_vm13, %vm463_vm3  ;;  %vm452_vm13 = vcmp.lt.s32.totalorder %v448_v46, 65 }
  0x29   : > { %1291 = vmatprep.subr.bf16.mxu0 %v1515_v24  ;;  %1311 = vmatprep.subr.bf16.mxu1 %v1515_v24  ;;  %vm471_vm4 = vmand %vm436_vm14, %vm465_vm15  ;;  %v494_v39 = vsel %vm470_vm2, 16843009, %v1710_v38 }
  0x2a   : > { %v495_v42 = vsel %vm471_vm4, 16843009, %v1710_v38  ;;  %v498_v43 = vunpack.c.0.s8 %v494_v39  ;;  %vm431_vm1 = vmpackc.low %vm1897_vm0, %vm1897_vm0  ;;  %vm453_vm0 = vcmp.lt.s32.totalorder %v449_v52, 65 }
  0x2b   : > { %v499_v47 = vunpack.c.0.s8 %v495_v42  ;;  %vm1924_vm3 = vmpackc.even %vm431_vm1, %vm431_vm1 }
  0x2c   : > { %1292 = vmatpush3.bf16.msra.mxu0 %v1515_v24  ;;  %1312 = vmatpush3.bf16.msra.mxu1 %v1515_v24  ;;  %vm1928_vm6 = vcmp.ne.s32.totalorder %v498_v43, 0  ;;  %vm433_vm8 = vmpackc.low %vm1913_vm5, %vm1913_vm5 }
  0x2d   : > { %1293 = vmatprep.subr.bf16.mxu0 %v1516_v30  ;;  %1313 = vmatprep.subr.bf16.mxu1 %v1516_v30  ;;  %vm1936_vm9 = vcmp.ne.s32.totalorder %v499_v47, 0  ;;  %vm434_vm11 = vmpackc.even %vm433_vm8, %vm433_vm8 }
  0x2e   : > { %vm1211_vm12 = vmpackc.low %vm1936_vm9, %vm1928_vm6  ;;  %vm625_vm6 = vcmask 130048  }
  0x2f   : > { %v1519_v57 = vpop.eup %1518  ;;  %1317 = vmatprep.mubr.msk.bf16.mxu1 %vm1211_vm12, %v1711_v58  ;;  %vm1954_vm14 = vmand %vm417_vm7, %vm1924_vm3 }
  0x30   : > { %1294 = vmatpush3.bf16.msra.mxu0 %v1516_v30  ;;  %1314 = vmatpush3.bf16.msra.mxu1 %v1516_v30  ;;  %v1521_v60 = vpop.eup %1520  ;;  %v490_v61 = vmul.f32 %v1519_v57, %v478_v50  ;;  %vm1958_vm15 = vmand %vm418_vm10, %vm434_vm11 }
  0x31   : > { %1295 = vmatprep.subr.bf16.mxu0 %v1517_v34  ;;  %1315 = vmatprep.subr.bf16.mxu1 %v1517_v34  ;;  %v491_v63 = vmul.f32 %v1521_v60, %v479_v53  ;;  %vm466_vm2 = vmpackc.low %vm452_vm13, %vm452_vm13  ;;  %v1523_v3 = vpop.eup %1522 }
  0x32   : > { %vm467_vm4 = vmpackc.even %vm466_vm2, %vm466_vm2  ;;  %v1525_v4 = vpop.eup %1524  ;;  %v492_v5 = vmul.f32 %v1523_v3, %v480_v0 }
  0x33   : > { %v1212_v2 = vpack.c.bf16 %v491_v63, %v490_v61  ;;  %vm468_vm5 = vmpackc.low %vm453_vm0, %vm453_vm0  ;;  %v493_v6 = vmul.f32 %v1525_v4, %v481_v1 }
  0x34   : > { %1296 = vmatpush3.bf16.msra.mxu0 %v1517_v34  ;;  %1316 = vmatpush3.bf16.msra.mxu1 %v1517_v34  ;;  %vm469_vm1 = vmpackc.even %vm468_vm5, %vm468_vm5 }
  0x35   : > { %1297 = vmatprep.mubr.msk.bf16.mxu0 %vm1211_vm12, %v1212_v2  ;;  %vm472_vm3 = vmand %vm1954_vm14, %vm467_vm4  ;;  %v1215_v11 = vpack.c.bf16 %v493_v6, %v492_v5 }
  0x36   : > { %vm473_vm7 = vmand %vm1958_vm15, %vm469_vm1  ;;  %v496_v7 = vsel %vm472_vm3, 16843009, %v1710_v38 }
  0x37   : > { %v497_v8 = vsel %vm473_vm7, 16843009, %v1710_v38  ;;  %v500_v9 = vunpack.c.0.s8 %v496_v7 }
  0x38   : > { %v501_v10 = vunpack.c.0.s8 %v497_v8 }
  0x39   : > { %vm504_vm8 = vcmp.ne.s32.totalorder %v500_v9, 0 }
  0x3a   : > { %vm505_vm10 = vcmp.ne.s32.totalorder %v501_v10, 0 }
  0x3b   : > { %vm1214_vm11 = vmpackc.low %vm505_vm10, %vm504_vm8 }
  0x3c   : > { %1298 = vmatmul.mubr.msk.bf16.vlgmr.msra.gmra.mxu0 %vm1214_vm11, %v1215_v11  ;;  %1318 = vmatmul.mubr.msk.bf16.vlgmr.msra.gmra.mxu1 %vm1214_vm11, %v1711_v58 }
  0xfc   : > { %v1299_v12 = vpop.f32.mrf.mxu0  ;;  %v1319_v13 = vpop.f32.mrf.mxu1 }
  0xfd   : > { %628 = vst.msk [vmem:[%s1972_s16 + $0x10] sm:$0xff] %vm625_vm6, %v1299_v12  ;;  %691 = vst.msk [vmem:[%s1976_s17 + $0x10] sm:$0xff] %vm625_vm6, %v1319_v13 }
  0xfe   : > { %v610_v14 = vpop.f32.mrf.mxu0  ;;  %v674_v15 = vpop.f32.mrf.mxu1 }
  0xff   : > { %626 = vst.msk [vmem:[%s1972_s16] sm:$0xff] %vm625_vm6, %v610_v14  ;;  %689 = vst.msk [vmem:[%s1976_s17] sm:$0xff] %vm625_vm6, %v674_v15  ;;  %703 = sbr.rel (!%p1788_p5) target bundleno = 299 (0x12b), region = 40 }
 0x100   : > { %v1300_v16 = vpop.f32.mrf.mxu0  ;;  %v1320_v17 = vpop.f32.mrf.mxu1 }
 0x101   : > { %629 = vst.msk [vmem:[%s1972_s16 + $0x18] sm:$0xff] %vm625_vm6, %v1300_v16  ;;  %692 = vst.msk [vmem:[%s1976_s17 + $0x18] sm:$0xff] %vm625_vm6, %v1320_v17 }
 0x102   : > { %v613_v18 = vpop.f32.mrf.mxu0  ;;  %v677_v19 = vpop.f32.mrf.mxu1 }
 0x103   : > { %627 = vst.msk [vmem:[%s1972_s16 + $0x8] sm:$0xff] %vm625_vm6, %v613_v18  ;;  %690 = vst.msk [vmem:[%s1976_s17 + $0x8] sm:$0xff] %vm625_vm6, %v677_v19 }
 0x104   : > { %s2157_s18 = smov (!%p706_p11, %s705_s18), 4 }
 0x105   : > { %s1228_s7 = sshll.u32 %s2157_s18, 7 }
 0x106   : > { %p1231_p12 = scmp.eq.s32.totalorder %s1228_s7, 0 }
 0x107   : > { %s2006_s9 = sshrl.u32 (!%p1231_p12), %s2157_s18, 2 }
 0x108   : > { %716 = sbr.rel (%p1231_p12) target bundleno = 299 (0x12b), region = 44  ;;  %p1232_p13 = scmp.le.s32.totalorder (!%p1231_p12), %s2006_s9, 0 }
 0x10d   : > { %1085 = sbr.rel (%p1232_p13) target bundleno = 282 (0x11a), region = 198  ;;  %s2138_s13 = smov (!%p1232_p13), %s2003_s28 }
 0x10e   : > { %s2139_s14 = smov (!%p1232_p13), %s1972_s16  ;;  %s2015_s20 = smov (!%p1232_p13), 0  }
 0x10f   : > { %s1658_s15 = smov (!%p1232_p13), 0  }
 0x112 LB: >> { %v785_v20 = vld [vmem:[%s1652_s14] sm:$0xff]  ;;  %v787_v21 = vld [vmem:[%s1652_s14 + $0x8] sm:$0xff]  ;;  %v789_v22 = vld [vmem:[%s1652_s14 + $0x10] sm:$0xff]  ;;  %s793_s27 = sadd.s32 1, %s1656_s20  ;;  %s779_s15 = sadd.s32 1, %s1660_s15   ;;  %s1660_s15 = sphi %s1658_s15, %s779_s15   ;;  %s1656_s20 = sphi %s2015_s20, %s2140_s20   ;;  %s1652_s14 = sphi %s2139_s14, %s798_s14   ;;  %s1648_s13 = sphi %s2138_s13, %s799_s13  }
 0x113   : >> { %786 = vst [vmem:[%s1648_s13] sm:$0xff] %v785_v20  ;;  %788 = vst [vmem:[%s1648_s13 + $0x8] sm:$0xff] %v787_v21  ;;  %v791_v23 = vld [vmem:[%s1652_s14 + $0x18] sm:$0xff]  ;;  %p794_p0 = scmp.ge.s32.totalorder %s793_s27, %s2006_s9  ;;  %p778_p1 = scmp.ge.s32.totalorder %s779_s15, %s2006_s9 }
 0x114   : >> { %790 = vst [vmem:[%s1648_s13 + $0x10] sm:$0xff] %v789_v22  ;;  %792 = vst [vmem:[%s1648_s13 + $0x18] sm:$0xff] %v791_v23 }
 0x115   : >> { %s2159_s27 = smov (%p794_p0, %s793_s27), 0  ;;  %781 = sbr.rel (!%p778_p1) target bundleno = 274 (0x112), region = 204 }
 0x116   : >> { %s1233_s30 = sshll.u32 %s2159_s27, 5  ;;  %s2140_s20 = smov %s2159_s27 }
 0x117   : >> { %s798_s14 = scalar_lea.vmem %s1972_s16, %s1233_s30 [#allocation2]   ;;  %s799_s13 = scalar_lea.vmem %s2003_s28, %s1233_s30  }
 0x11a PF: > { %s2031_s6 = sand.u32 3, %s2157_s18   ;;  %s1257_s7 = sshll.u32 %s2006_s9, 5 }
 0x11b   : > { %s804_s10 = scalar_lea.vmem %s1972_s16, %s1257_s7 [#allocation2]   ;;  %s806_s12 = scalar_lea.vmem %s2003_s28, %s1257_s7  }
 0x11c   : > { %p1238_p2 = scmp.le.s32.totalorder %s2031_s6, 0 }
 0x11d   : > { %s1662_s20 = smov (!%p1238_p2), %s806_s12   ;;  %s1666_s30 = smov (!%p1238_p2), %s804_s10  }
 0x11e   : > { %1099 = sbr.rel (%p1238_p2) target bundleno = 299 (0x12b), region = 209  ;;  %s1670_s0 = smov (!%p1238_p2), 0  }
 0x11f   : > { %s1674_s1 = smov (!%p1238_p2), 0  }
 0x123 LB: >> { %v816_v24 = vld [vmem:[%s1668_s30] sm:$0xff]  ;;  %s818_s18 = sadd.s32 1, %s1672_s0  ;;  %s810_s1 = sadd.s32 1, %s1676_s1   ;;  %s1676_s1 = sphi %s1674_s1, %s810_s1   ;;  %s1672_s0 = sphi %s1670_s0, %s1671_s0   ;;  %s1668_s30 = sphi %s1666_s30, %s823_s30   ;;  %s1664_s20 = sphi %s1662_s20, %s824_s20  }
 0x124   : >> { %817 = vst [vmem:[%s1664_s20] sm:$0xff] %v816_v24  ;;  %p819_p3 = scmp.ge.s32.totalorder %s818_s18, %s2031_s6  ;;  %p809_p4 = scmp.ge.s32.totalorder %s810_s1, %s2031_s6 }
 0x126   : >> { %s2161_s18 = smov (%p819_p3, %s818_s18), 0  ;;  %812 = sbr.rel (!%p809_p4) target bundleno = 291 (0x123), region = 215 }
 0x127   : >> { %s1239_s16 = sshll.u32 %s2161_s18, 3  ;;  %s1671_s0 = smov %s2161_s18  }
 0x128   : >> { %s823_s30 = scalar_lea.vmem %s804_s10, %s1239_s16 [#allocation2]   ;;  %s824_s20 = scalar_lea.vmem %s806_s12, %s1239_s16  }
 0x12b PF: > { %830 = sbr.rel (!%p1788_p5) target bundleno = 343 (0x157), region = 92  ;;  %s832_s0 = ssub.s32 (%p1788_p5), 9, %s1805_s11 }
 0x12c   : > { %s1323_s28 = smul.u32 (%p1788_p5), 9, %s1632_s21  ;;  %p833_p6 = scmp.lt.s32.totalorder (%p1788_p5), %s832_s0, 4 }
 0x12e   : > { %s838_s9 = sadd.s32 (%p1788_p5), %s1323_s28, %s1805_s11 }
 0x12f   : > { %s1244_s13 = sshll.u32 (%p1788_p5), %s838_s9, 3 }
 0x130   : > { %s2163_s0 = smov (!%p833_p6, %s832_s0), 4  ;;  %s2050_s27 = scalar_lea.vmem %s2112_s5, %s1244_s13  }
 0x131   : > { %s1242_s14 = sshll.u32 %s2163_s0, 7 }
 0x132   : > { %p1245_p7 = scmp.eq.s32.totalorder %s1242_s14, 0 }
 0x133   : > { %s2053_s29 = sshrl.u32 (!%p1245_p7), %s2163_s0, 2 }
 0x134   : > { %843 = sbr.rel (%p1245_p7) target bundleno = 343 (0x157), region = 96  ;;  %p1246_p5 = scmp.le.s32.totalorder (!%p1245_p7), %s2053_s29, 0 }
 0x139   : > { %1113 = sbr.rel (%p1246_p5) target bundleno = 326 (0x146), region = 220  ;;  %s2141_s21 = smov (!%p1246_p5), %s2050_s27 }
 0x13a   : > { %s2142_s11 = smov (!%p1246_p5), %s1976_s17  ;;  %s2062_s6 = smov (!%p1246_p5), 0  }
 0x13b   : > { %s1690_s7 = smov (!%p1246_p5), 0  }
 0x13e LB: >> { %v912_v25 = vld [vmem:[%s1684_s11] sm:$0xff]  ;;  %v914_v26 = vld [vmem:[%s1684_s11 + $0x8] sm:$0xff]  ;;  %v916_v27 = vld [vmem:[%s1684_s11 + $0x10] sm:$0xff]  ;;  %s920_s10 = sadd.s32 1, %s1688_s6  ;;  %s906_s7 = sadd.s32 1, %s1692_s7   ;;  %s1692_s7 = sphi %s1690_s7, %s906_s7   ;;  %s1688_s6 = sphi %s2062_s6, %s2143_s6   ;;  %s1684_s11 = sphi %s2142_s11, %s925_s11   ;;  %s1680_s21 = sphi %s2141_s21, %s926_s21  }
 0x13f   : >> { %913 = vst [vmem:[%s1680_s21] sm:$0xff] %v912_v25  ;;  %915 = vst [vmem:[%s1680_s21 + $0x8] sm:$0xff] %v914_v26  ;;  %v918_v28 = vld [vmem:[%s1684_s11 + $0x18] sm:$0xff]  ;;  %p921_p8 = scmp.ge.s32.totalorder %s920_s10, %s2053_s29  ;;  %p905_p9 = scmp.ge.s32.totalorder %s906_s7, %s2053_s29 }
 0x140   : >> { %917 = vst [vmem:[%s1680_s21 + $0x10] sm:$0xff] %v916_v27  ;;  %919 = vst [vmem:[%s1680_s21 + $0x18] sm:$0xff] %v918_v28 }
 0x141   : >> { %s2165_s10 = smov (%p921_p8, %s920_s10), 0  ;;  %908 = sbr.rel (!%p905_p9) target bundleno = 318 (0x13e), region = 226 }
 0x142   : >> { %s1247_s12 = sshll.u32 %s2165_s10, 5  ;;  %s2143_s6 = smov %s2165_s10 }
 0x143   : >> { %s925_s11 = scalar_lea.vmem %s1976_s17, %s1247_s12 [#allocation3]   ;;  %s926_s21 = scalar_lea.vmem %s2050_s27, %s1247_s12  }
 0x146 PF: > { %s2078_s20 = sand.u32 3, %s2163_s0   ;;  %s1259_s30 = sshll.u32 %s2053_s29, 5 }
 0x147   : > { %s931_s18 = scalar_lea.vmem %s1976_s17, %s1259_s30 [#allocation3]   ;;  %s933_s16 = scalar_lea.vmem %s2050_s27, %s1259_s30  }
 0x148   : > { %p1252_p10 = scmp.le.s32.totalorder %s2078_s20, 0 }
 0x149   : > { %s1694_s28 = smov (!%p1252_p10), %s933_s16   ;;  %s1698_s9 = smov (!%p1252_p10), %s931_s18  }
 0x14a   : > { %1127 = sbr.rel (%p1252_p10) target bundleno = 343 (0x157), region = 231  ;;  %s1702_s13 = smov (!%p1252_p10), 0  }
 0x14b   : > { %s1706_s14 = smov (!%p1252_p10), 0  }
 0x14f LB: >> { %v943_v29 = vld [vmem:[%s1700_s9] sm:$0xff]  ;;  %s945_s0 = sadd.s32 1, %s1704_s13  ;;  %s937_s14 = sadd.s32 1, %s1708_s14   ;;  %s1708_s14 = sphi %s1706_s14, %s937_s14   ;;  %s1704_s13 = sphi %s1702_s13, %s1703_s13   ;;  %s1700_s9 = sphi %s1698_s9, %s950_s9   ;;  %s1696_s28 = sphi %s1694_s28, %s951_s28  }
 0x150   : >> { %944 = vst [vmem:[%s1696_s28] sm:$0xff] %v943_v29  ;;  %p946_p11 = scmp.ge.s32.totalorder %s945_s0, %s2078_s20  ;;  %p936_p12 = scmp.ge.s32.totalorder %s937_s14, %s2078_s20 }
 0x152   : >> { %s2167_s0 = smov (%p946_p11, %s945_s0), 0  ;;  %939 = sbr.rel (!%p936_p12) target bundleno = 335 (0x14f), region = 237 }
 0x153   : >> { %s1253_s17 = sshll.u32 %s2167_s0, 3  ;;  %s1703_s13 = smov %s2167_s0  }
 0x154   : >> { %s950_s9 = scalar_lea.vmem %s931_s18, %s1253_s17 [#allocation3]   ;;  %s951_s28 = scalar_lea.vmem %s933_s16, %s1253_s17  }
 0x157 PF: > { %s16_s24 = sadd.s32 1, %s1644_s24   ;;  %s2144_s18 = smov %s1624_s19 }
 0x158   : > { %p13_p13 = scmp.ge.s32.totalorder %s16_s24, 8   ;;  %s2145_s19 = smov %s1799_s8 }
 0x159   : > { %s2146_s20 = smov %s1636_s22  ;;  %s2147_s21 = smov %s1640_s23 }
 0x15a   : > { %s2148_s22 = smov %s2151_s25  ;;  %s2149_s23 = smov %s2155_s26 }
 0x15b   :  { %15 = sbr.rel (!%p13_p13) target bundleno = 7 (0x7), region = 248 }

</bundles_post_ra>
